<compile_context>
chip_gen: v6e
topology: v6e:2x2x1
jax: 0.10.0
libtpu: 0.0.40
codegen_flags: <defaults>
</compile_context>

<pallas_src>
import functools

import jax
import jax.numpy as jnp
from jax.experimental import pallas as pl
from jax.experimental.pallas import tpu as pltpu

GAMMA = 1.5
ALPHA = 0.25

_LANES = 128
_ACC_ROWS = 8            # f32 vreg sublane count; accumulator tile is (8, 128)
_MAX_BLOCK_ROWS = 8192   # 4 MiB/input/buffer; safe for v7x's 64 MiB VMEM


def _round_down(x, m):
    return (x // m) * m


def _focal_kernel(pred_ref, true_ref, out_ref, *, gamma, alpha):
    # Output block is resident across the streaming axis k (its index_map
    # ignores k), so accumulate straight into it: init at k==0, add each step.
    @pl.when(pl.program_id(1) == 0)
    def _init():
        out_ref[...] = jnp.zeros_like(out_ref)

    x = pred_ref[...].astype(jnp.float32)
    y = true_ref[...].astype(jnp.float32)

    # Shared transcendental: e = exp(-|x|), reused by BCE and sigmoid.
    e = jnp.exp(-jnp.abs(x))

    # BCEWithLogitsLoss(reduction='none'), numerically stable:
    #   max(x, 0) - x*y + log(1 + exp(-|x|))
    bce = jnp.maximum(x, 0.0) - x * y + jnp.log1p(e)

    # sigmoid(x) via the shared exp; approx reciprocal + one Newton step
    # (keeps ~f32 precision while freeing the divide off the EUP budget).
    d = 1.0 + e
    r = pl.reciprocal(d, approx=True)
    r = r * (2.0 - d * r)                      # Newton refinement, 2 VPU ops
    p = jnp.where(x >= 0.0, r, e * r)          # x>=0: 1/(1+e), x<0: e/(1+e)

    # Focal modulation.
    p_t = y * p + (1.0 - y) * (1.0 - p)
    alpha_factor = y * alpha + (1.0 - y) * (1.0 - alpha)
    t = jnp.maximum(1.0 - p_t, 0.0)            # guard sqrt against tiny negatives
    if gamma == 1.5:
        modulating_factor = t * jnp.sqrt(t)    # t**1.5, one EUP op
    elif gamma == float(int(gamma)):
        modulating_factor = t ** int(gamma)    # integer pow -> plain muls
    else:
        modulating_factor = t ** gamma         # general (exp/log) fallback
    loss = bce * (alpha_factor * modulating_factor)

    # Fold the (block_rows, 128) tile into the resident (8, 128) output block
    # with pure VPU vreg adds; no cross-lane reduction in the hot loop.
    out_ref[...] += loss.reshape(-1, _ACC_ROWS, _LANES).sum(axis=0)


def _focal_terms(x, y, gamma, alpha):
    """Same math as the kernel, in plain JAX (used for the tiny ragged tail)."""
    x = x.astype(jnp.float32)
    y = y.astype(jnp.float32)
    e = jnp.exp(-jnp.abs(x))
    bce = jnp.maximum(x, 0.0) - x * y + jnp.log1p(e)
    r = 1.0 / (1.0 + e)
    p = jnp.where(x >= 0.0, r, e * r)
    p_t = y * p + (1.0 - y) * (1.0 - p)
    alpha_factor = y * alpha + (1.0 - y) * (1.0 - alpha)
    t = jnp.maximum(1.0 - p_t, 0.0)
    if gamma == 1.5:
        mf = t * jnp.sqrt(t)
    else:
        mf = t ** gamma
    return bce * (alpha_factor * mf)


def _sublane_align(dtype):
    # Native sublane packing: f32 -> 8 rows/vreg, bf16 -> 16, int8/fp8 -> 32.
    return max(_ACC_ROWS, 32 // max(1, jnp.dtype(dtype).itemsize))


def focal_loss(pred, true, gamma=GAMMA, alpha=ALPHA, *,
               block_rows=2048, reduction="mean"):
    """Focal loss (FocalLoss(nn.BCEWithLogitsLoss())), 'mean' or 'sum' reduction."""
    assert pred.shape == true.shape
    if reduction not in ("mean", "sum"):
        # TODO(synk): reduction='none' (full elementwise output) would need a
        # different (elementwise-output) kernel; only 'mean'/'sum' implemented.
        raise NotImplementedError("reduction must be 'mean' or 'sum'")

    total = int(pred.size)
    if total == 0:
        return jnp.float32(0.0)
    gamma = float(gamma)
    alpha = float(alpha)

    flat_pred = pred.reshape(-1)
    flat_true = true.reshape(-1)

    # Lane alignment: pad (< 128 elems) with loss-neutral sentinels only when
    # total is not already a multiple of 128 (pred=80, true=1 -> loss == 0).
    # This is the only O(total) copy and only on truly lane-ragged sizes.
    rem = total % _LANES
    if rem:
        pad = _LANES - rem
        flat_pred = jnp.pad(flat_pred, (0, pad), constant_values=80)
        flat_true = jnp.pad(flat_true, (0, pad), constant_values=1)
    rows = int(flat_pred.size) // _LANES

    # ---------------- block sizing ----------------
    row_align = max(_sublane_align(pred.dtype), _sublane_align(true.dtype))
    max_br = max(_ACC_ROWS, _round_down(min(int(block_rows), _MAX_BLOCK_ROWS),
                                        _ACC_ROWS))

    # Feed both v7x TensorCores via the leading 'parallel' axis whenever there
    # are at least two alignable blocks of work (serial-loop no-op on v5e/v6e).
    num_cores = 2 if rows >= 2 * row_align else 1
    rows_per_core = rows // num_cores
    br = 0
    steps = 1
    if rows_per_core >= _ACC_ROWS:
        steps = max(1, -(-rows_per_core // max_br))
        q = rows_per_core // steps
        align = row_align if q >= row_align else _ACC_ROWS
        br = _round_down(q, align)

    if br == 0:
        # Too small for even one (8,128) block: pure-JAX fallback.
        loss_sum = jnp.sum(_focal_terms(flat_pred, flat_true, gamma, alpha))
        return loss_sum / total if reduction == "mean" else loss_sum

    pred2 = flat_pred.reshape(rows, _LANES)   # free (bitcast) reshape
    true2 = flat_true.reshape(rows, _LANES)

    main_rows = num_cores * steps * br        # block-aligned prefix the kernel covers
    main_elems = main_rows * _LANES

    kernel = functools.partial(_focal_kernel, gamma=gamma, alpha=alpha)
    in_map = lambda c, k: (c * steps + k, 0)

    cost = pl.CostEstimate(
        flops=25 * main_elems,
        transcendentals=4 * main_elems,          # exp, log1p, vrcp, sqrt
        bytes_accessed=main_elems * (pred2.dtype.itemsize + true2.dtype.itemsize)
        + num_cores * _ACC_ROWS * _LANES * 4,
    )

    partials = pl.pallas_call(
        kernel,
        out_shape=jax.ShapeDtypeStruct((num_cores * _ACC_ROWS, _LANES),
                                       jnp.float32),
        grid_spec=pltpu.PrefetchScalarGridSpec(
            num_scalar_prefetch=0,
            grid=(num_cores, steps),
            in_specs=[
                pl.BlockSpec((br, _LANES), in_map),
                pl.BlockSpec((br, _LANES), in_map),
            ],
            out_specs=pl.BlockSpec((_ACC_ROWS, _LANES), lambda c, k: (c, 0)),
        ),
        compiler_params=pltpu.CompilerParams(
            dimension_semantics=("parallel", "arbitrary")),
        cost_estimate=cost,
    )(pred2, true2)

    # Single cross-lane reduce, once, outside the hot loop.
    loss_sum = jnp.sum(partials)

    # Few leftover rows (< one block group) that the grid didn't cover: tiny,
    # handled in plain JAX (sentinel-padded elements contribute exactly 0).
    if main_rows < rows:
        loss_sum = loss_sum + jnp.sum(
            _focal_terms(pred2[main_rows:], true2[main_rows:], gamma, alpha))

    return loss_sum / total if reduction == "mean" else loss_sum


def _reference(pred, true, gamma=GAMMA, alpha=ALPHA):
    x = pred.astype(jnp.float32)
    y = true.astype(jnp.float32)
    bce = jnp.maximum(x, 0.0) - x * y + jnp.log1p(jnp.exp(-jnp.abs(x)))
    p = jax.nn.sigmoid(x)
    p_t = y * p + (1 - y) * (1 - p)
    af = y * alpha + (1 - y) * (1 - alpha)
    mf = (1.0 - p_t) ** gamma
    return jnp.mean(bce * af * mf)


if __name__ == "__main__":
    key = jax.random.PRNGKey(0)
    k1, k2 = jax.random.split(key)

    # NCHW-like prediction logits and {0,1} targets (small demo shape).
    pred = jax.random.normal(k1, (2, 4, 16, 16), dtype=jnp.float32) * 2.0
    true = (jax.random.uniform(k2, (2, 4, 16, 16)) > 0.5).astype(jnp.float32)
    out = jax.block_until_ready(focal_loss(pred, true))
    ref = _reference(pred, true)
    assert jnp.allclose(out, ref, atol=1e-5, rtol=1e-5), (out, ref)

    # Lane-ragged shape (total % 128 != 0): exercises the tiny sentinel pad
    # plus the JAX row-tail path.
    k3, k4 = jax.random.split(k2)
    pred_r = jax.random.normal(k3, (3, 5, 7, 11), dtype=jnp.float32)
    true_r = (jax.random.uniform(k4, (3, 5, 7, 11)) > 0.5).astype(jnp.float32)
    out_r = jax.block_until_ready(focal_loss(pred_r, true_r))
    ref_r = _reference(pred_r, true_r)
    assert jnp.allclose(out_r, ref_r, atol=1e-5, rtol=1e-5), (out_r, ref_r)

    # Lane-aligned but not block-aligned: kernel covers the aligned prefix
    # (no copies), small row tail summed in JAX; 2-core grid.
    k5, k6 = jax.random.split(k4)
    pred_m = jax.random.normal(k5, (6, 7, 10, 64), dtype=jnp.float32)
    true_m = (jax.random.uniform(k6, (6, 7, 10, 64)) > 0.5).astype(jnp.float32)
    out_m = jax.block_until_ready(focal_loss(pred_m, true_m))
    ref_m = _reference(pred_m, true_m)
    assert jnp.allclose(out_m, ref_m, atol=1e-6, rtol=1e-4), (out_m, ref_m)

    # Larger shape with a small forced block: exercises the multi-step
    # resident-output accumulation and the 2-core grid.
    k7, k8 = jax.random.split(k6)
    pred_l = jax.random.normal(k7, (8, 16, 32, 32), dtype=jnp.float32)
    true_l = (jax.random.uniform(k8, (8, 16, 32, 32)) > 0.5).astype(jnp.float32)
    out_l = jax.block_until_ready(focal_loss(pred_l, true_l, block_rows=128))
    ref_l = _reference(pred_l, true_l)
    assert jnp.allclose(out_l, ref_l, atol=1e-6, rtol=1e-4), (out_l, ref_l)

    print("KERNEL_OK")
</pallas_src>

<mosaic_0001>
module attributes {stable_mosaic.version = 11 : i64} {
  func.func @_focal_kernel(%arg0: i32, %arg1: i32, %arg2: memref<8x128xf32, #tpu.memory_space<vmem>>, %arg3: memref<8x128xf32, #tpu.memory_space<vmem>>, %arg4: memref<8x128xf32, #tpu.memory_space<vmem>>) attributes {dimension_semantics = [#tpu.dimension_semantics<parallel>, #tpu.dimension_semantics<arbitrary>], iteration_bounds = array<i64: 2, 1>, scalar_prefetch = 0 : i64, scratch_operands = 0 : i64, tpu.core_type = #tpu.core_type<tc>, window_params = [{transform_indices = @transform_0, window_bounds = array<i64: 8, 128>}, {transform_indices = @transform_1, window_bounds = array<i64: 8, 128>}, {transform_indices = @transform_2, window_bounds = array<i64: 8, 128>}]} {
    %c0_i32 = arith.constant 0 : i32
    %0 = arith.cmpi eq, %arg1, %c0_i32 : i32
    %1 = arith.extui %0 : i1 to i32
    %c0_i32_0 = arith.constant 0 : i32
    %2 = arith.cmpi ne, %1, %c0_i32_0 : i32
    scf.if %2 {
      %cst_20 = arith.constant 0.000000e+00 : f32
      %53 = vector.broadcast %cst_20 : f32 to vector<8x128xf32>
      %c0_21 = arith.constant 0 : index
      %c0_22 = arith.constant 0 : index
      %54 = vector.load %arg4[%c0_21, %c0_22] : memref<8x128xf32, #tpu.memory_space<vmem>>, vector<8x128xf32>
      tpu.vector_store %arg4[%c0_21, %c0_22], %53 {strides = array<i32>} : memref<8x128xf32, #tpu.memory_space<vmem>>, vector<8x128xf32>,
    } else {
    }
    %c0 = arith.constant 0 : index
    %c0_1 = arith.constant 0 : index
    %3 = vector.load %arg2[%c0, %c0_1] : memref<8x128xf32, #tpu.memory_space<vmem>>, vector<8x128xf32>
    %c0_2 = arith.constant 0 : index
    %c0_3 = arith.constant 0 : index
    %4 = vector.load %arg3[%c0_2, %c0_3] : memref<8x128xf32, #tpu.memory_space<vmem>>, vector<8x128xf32>
    %5 = math.absf %3 : vector<8x128xf32>
    %cst = arith.constant 0.000000e+00 : f32
    %6 = vector.broadcast %cst : f32 to vector<8x128xf32>
    %7 = arith.subf %6, %5 : vector<8x128xf32>
    %8 = math.exp %7 : vector<8x128xf32>
    %cst_4 = arith.constant 0.000000e+00 : f32
    %9 = vector.broadcast %cst_4 : f32 to vector<8x128xf32>
    %10 = arith.maximumf %3, %9 : vector<8x128xf32>
    %11 = arith.mulf %3, %4 : vector<8x128xf32>
    %12 = arith.subf %10, %11 : vector<8x128xf32>
    %13 = math.log1p %8 : vector<8x128xf32>
    %14 = arith.addf %12, %13 : vector<8x128xf32>
    %cst_5 = arith.constant 1.000000e+00 : f32
    %15 = vector.broadcast %cst_5 : f32 to vector<8x128xf32>
    %16 = arith.addf %15, %8 : vector<8x128xf32>
    %17 = tpu.reciprocal %16 {approx = true} : vector<8x128xf32> -> vector<8x128xf32>
    %18 = arith.mulf %16, %17 : vector<8x128xf32>
    %cst_6 = arith.constant 2.000000e+00 : f32
    %19 = vector.broadcast %cst_6 : f32 to vector<8x128xf32>
    %20 = arith.subf %19, %18 : vector<8x128xf32>
    %21 = arith.mulf %17, %20 : vector<8x128xf32>
    %cst_7 = arith.constant 0.000000e+00 : f32
    %22 = vector.broadcast %cst_7 : f32 to vector<8x128xf32>
    %23 = arith.cmpf oge, %3, %22 : vector<8x128xf32>
    %24 = arith.mulf %8, %21 : vector<8x128xf32>
    %25 = arith.select %23, %21, %24 : vector<8x128xi1>, vector<8x128xf32>
    %26 = arith.mulf %4, %25 : vector<8x128xf32>
    %cst_8 = arith.constant 1.000000e+00 : f32
    %27 = vector.broadcast %cst_8 : f32 to vector<8x128xf32>
    %28 = arith.subf %27, %4 : vector<8x128xf32>
    %cst_9 = arith.constant 1.000000e+00 : f32
    %29 = vector.broadcast %cst_9 : f32 to vector<8x128xf32>
    %30 = arith.subf %29, %25 : vector<8x128xf32>
    %31 = arith.mulf %28, %30 : vector<8x128xf32>
    %32 = arith.addf %26, %31 : vector<8x128xf32>
    %cst_10 = arith.constant 2.500000e-01 : f32
    %33 = vector.broadcast %cst_10 : f32 to vector<8x128xf32>
    %34 = arith.mulf %4, %33 : vector<8x128xf32>
    %cst_11 = arith.constant 1.000000e+00 : f32
    %35 = vector.broadcast %cst_11 : f32 to vector<8x128xf32>
    %36 = arith.subf %35, %4 : vector<8x128xf32>
    %cst_12 = arith.constant 7.500000e-01 : f32
    %37 = vector.broadcast %cst_12 : f32 to vector<8x128xf32>
    %38 = arith.mulf %36, %37 : vector<8x128xf32>
    %39 = arith.addf %34, %38 : vector<8x128xf32>
    %cst_13 = arith.constant 1.000000e+00 : f32
    %40 = vector.broadcast %cst_13 : f32 to vector<8x128xf32>
    %41 = arith.subf %40, %32 : vector<8x128xf32>
    %cst_14 = arith.constant 0.000000e+00 : f32
    %42 = vector.broadcast %cst_14 : f32 to vector<8x128xf32>
    %43 = arith.maximumf %41, %42 : vector<8x128xf32>
    %44 = math.sqrt %43 : vector<8x128xf32>
    %45 = arith.mulf %43, %44 : vector<8x128xf32>
    %46 = arith.mulf %39, %45 : vector<8x128xf32>
    %47 = arith.mulf %14, %46 : vector<8x128xf32>
    %c0_15 = arith.constant 0 : index
    %c0_16 = arith.constant 0 : index
    %48 = vector.load %arg4[%c0_15, %c0_16] : memref<8x128xf32, #tpu.memory_space<vmem>>, vector<8x128xf32>
    %49 = vector.shape_cast %47 : vector<8x128xf32> to vector<1x8x128xf32>
    %cst_17 = arith.constant dense<0.000000e+00> : vector<8x128xf32>
    %50 = vector.multi_reduction <add>, %49, %cst_17 [0] : vector<1x8x128xf32> to vector<8x128xf32>
    %51 = arith.addf %48, %50 : vector<8x128xf32>
    %c0_18 = arith.constant 0 : index
    %c0_19 = arith.constant 0 : index
    %52 = vector.load %arg4[%c0_18, %c0_19] : memref<8x128xf32, #tpu.memory_space<vmem>>, vector<8x128xf32>
    tpu.vector_store %arg4[%c0_18, %c0_19], %51 {strides = array<i32>} : memref<8x128xf32, #tpu.memory_space<vmem>>, vector<8x128xf32>,
    return
  }
  func.func @transform_0(%arg0: i32, %arg1: i32) -> (i32, i32) {
    %c1_i32 = arith.constant 1 : i32
    %0 = arith.muli %arg0, %c1_i32 : i32
    %1 = arith.addi %0, %arg1 : i32
    %c0_i32 = arith.constant 0 : i32
    %c0_i32_0 = arith.constant 0 : i32
    return %1, %c0_i32 : i32, i32
  }
  func.func @transform_1(%arg0: i32, %arg1: i32) -> (i32, i32) {
    %c1_i32 = arith.constant 1 : i32
    %0 = arith.muli %arg0, %c1_i32 : i32
    %1 = arith.addi %0, %arg1 : i32
    %c0_i32 = arith.constant 0 : i32
    %c0_i32_0 = arith.constant 0 : i32
    return %1, %c0_i32 : i32, i32
  }
  func.func @transform_2(%arg0: i32, %arg1: i32) -> (i32, i32) {
    %c0_i32 = arith.constant 0 : i32
    %c0_i32_0 = arith.constant 0 : i32
    return %arg0, %c0_i32 : i32, i32
  }
}

</mosaic_0001>

<bundles_post_ra>
// kernel: tpu_custom_call.1
= control target key start
LH: loop header
LB: loop body
LE: loop exit
PB: predicated region body
PF: predicated region fallthrough
CT: control target
= control target key end

     0   :  { %7 = vsyncpa [#allocation3], 0  ;;  %s807_s0 = inlined_call_operand.hbm [shape: f32[16,128], index: 0, kind: input, shape index: {}]   ;;  %s808_s1 = inlined_call_operand.hbm [shape: f32[16,128], index: 1, kind: input, shape index: {}]   ;;  %s809_s2 = inlined_call_operand.hbm [shape: f32[16,128], index: 2, kind: output, shape index: {}]  }
   0x1   :  { %9 = vsyncpa [#allocation3 + $0x1], 0 }
   0x2   :  { %10 = vsyncpa [#allocation6], 0 }
   0x3   :  { %12 = vsyncpa [#allocation6 + $0x1], 0 }
   0x4   :  { %13 = vsyncpa [#allocation4], 0 }
   0x5   :  { %15 = vsyncpa [#allocation4 + $0x1], 0  ;;  %s641_s9 = smov 0   ;;  %s643_s10 = smov 0  }
   0x6   :  { %s645_s11 = smov 0   ;;  %s647_s12 = smov 0  }
   0x7   :  { %s649_s13 = smov 0   ;;  %s651_s14 = smov 0  }
   0x8 LB: > { %s389_s15 = sadd.s32 4294967295, %s621_s14   ;;  %s390_s16 = sadd.s32 4294967294, %s621_s14   ;;  %s621_s14 = sphi %s651_s14, %s21_s14   ;;  %s617_s13 = sphi %s649_s13, %s821_s13   ;;  %s613_s12 = sphi %s647_s12, %s820_s12   ;;  %s609_s11 = sphi %s645_s11, %s819_s11   ;;  %s605_s10 = sphi %s643_s10, %s818_s10   ;;  %s601_s9 = sphi %s641_s9, %s817_s9  }
   0x9   : > { %s33_s17 = sadd.s32 1, %s617_s13  ;;  %s42_s18 = sadd.s32 1, %s609_s11 }
   0xa   : > { %p35_p0 = scmp.ge.s32.totalorder %s33_s17, 2  ;;  %p49_p1 = scmp.ne.s32.totalorder %s609_s11, %s605_s10 }
   0xb   : > { %p50_p2 = scmp.eq.s32.totalorder %s621_s14, 0  ;;  %p55_p3 = scmp.ne.s32.totalorder %s605_s10, %s601_s9 }
   0xc   : > { %s823_s17 = smov (%p35_p0, %s33_s17), 0  ;;  %p56_p5 = scmp.eq.s32.totalorder %s389_s15, 0 }
   0xd   : > { %p682_p4 = por %p50_p2, %p49_p1  ;;  %s39_s20 = ssub.s32 %s617_s13, %s823_s17 }
   0xe   : > { %p107_p6 = scmp.eq.s32.totalorder %s389_s15, 1  ;;  %p40_p7 = scmp.eq.s32.totalorder %s39_s20, 0 }
   0xf   : > { %p688_p8 = por %p56_p5, %p55_p3  ;;  %p113_p10 = scmp.eq.s32.totalorder %s390_s16, 1 }
  0x10   : > { %p692_p9 = por %p107_p6, %p49_p1  ;;  %p422_p13 = scmp.lt.s32.totalorder %s621_s14, 2 }
  0x11   : > { %s697_s23 = scalar_select %p40_p7, %s609_s11, %s42_s18  }
  0x12   : > { %p699_p11 = por %p113_p10, %p55_p3  ;;  %s706_s25 = sand.u32 1, %s609_s11  }
  0x13   : > { %s393_s26 = sshll.u32 %s706_s25, 3  ;;  %s394_s27 = sshll.u32 %s617_s13, 7 }
  0x14   : > { %s143_s30 = scalar_lea.hbm %s807_s0, %s394_s27  ;;  %s137_s3 = scalar_lea.vmem [#allocation2], %s393_s26 }
  0x15   : > { %s145_s4 = sshll.u32 %s137_s3, 4  ;;  %p715_p0 = pnand %p422_p13, %p682_p4  ;;  %s146_s4 = int_to_ptr.vmem [resolvable:$true] %s145_s4 }
  0x16   : > { %p397_p1 = scmp.ge.s32.totalorder %s621_s14, 1  ;;  %p169_p2 = scmp.lt.s32.totalorder %s621_s14, 3 }
  0x17   : > { %s134_s6 = scalar_lea.sflag [#allocation3], %s706_s25  ;;  %p483_p3 = pneg %p715_p0 }
  0x18   : > { %s494_s7 = scalar_lea.vmem %s146_s4, 128  ;;  %s623_s8 = smov [#allocation2]  }
  0x19   : > { %p495_p5 = scmp.ne.s32.totalorder %s146_s4, %s494_s7  ;;  %s499_s15 = sshll.u32 %s623_s8, 4  ;;  %s500_s15 = int_to_ptr.vmem [resolvable:$false] %s499_s15 }
  0x1a   : > { %s501_s16 = scalar_lea.vmem %s500_s15, 256  ;;  %p502_p4 = scmp.lt.s32.totalorder %s146_s4, %s500_s15 }
  0x1b   : > { %p497_p6 = pnand %p495_p5, %p483_p3  ;;  %p503_p10 = scmp.lt.s32.totalorder %s501_s16, %s494_s7 }
  0x1d   : > { %p498_p7 = pneg %p497_p6  ;;  %p504_p13 = por %p503_p10, %p502_p4 }
  0x1f   : > { %p505_p12 = pnand %p504_p13, %p498_p7 }
  0x21   : > { %508 = shalt.err (!%p505_p12)
}
  0x22   : > { %414 = dma.hbm_to_vmem [thread:$0]  (!%p715_p0), %s143_s30, 128, %s146_s4, %s134_s6  }
  0x23   : > { %p733_p5 = pnand %p397_p1, %p169_p2  ;;  %s162_s28 = scalar_lea.hbm %s808_s1, %s394_s27 }
  0x24   : > { %s156_s29 = scalar_lea.vmem [#allocation5], %s393_s26  ;;  %s153_s7 = scalar_lea.sflag [#allocation6], %s706_s25 }
  0x25   : > { %s164_s3 = sshll.u32 %s156_s29, 4  ;;  %s624_s30 = smov [#allocation5]   ;;  %s165_s3 = int_to_ptr.vmem [resolvable:$true] %s164_s3 }
  0x26   : > { %s522_s8 = scalar_lea.vmem %s165_s3, 128  ;;  %s527_s4 = sshll.u32 %s624_s30, 4  ;;  %s528_s4 = int_to_ptr.vmem [resolvable:$false] %s527_s4 }
  0x27   : > { %p523_p12 = scmp.ne.s32.totalorder %s165_s3, %s522_s8  ;;  %s529_s6 = scalar_lea.vmem %s528_s4, 256 }
  0x28   : > { %p530_p1 = scmp.lt.s32.totalorder %s165_s3, %s528_s4  ;;  %p531_p2 = scmp.lt.s32.totalorder %s529_s6, %s522_s8 }
  0x29   : > { %p525_p6 = pnand %p523_p12, %p483_p3 }
  0x2a   : > { %p532_p4 = por %p531_p2, %p530_p1 }
  0x2b   : > { %p526_p7 = pneg %p525_p6 }
  0x2d   : > { %p533_p10 = pnand %p532_p4, %p526_p7 }
  0x2f   : > { %536 = shalt.err (!%p533_p10)
}
  0x30   : > { %417 = dma.hbm_to_vmem [thread:$0]  (!%p715_p0), %s162_s28, 128, %s165_s3, %s153_s7  }
  0x31   : > { %173 = sbr.rel (%p733_p5) target bundleno = 151 (0x97), region = 28  ;;  %s749_s25 = sand.u32 (!%p733_p5), 1, %s605_s10  }
  0x32   : > { %s752_s26 = sshll.u32 (!%p733_p5), %s749_s25, 3  ;;  %s176_s27 = scalar_lea.sflag (!%p733_p5), [#allocation3], %s749_s25 }
  0x33   : > { %s179_s15 = scalar_lea.vmem (!%p733_p5), [#allocation2], %s752_s26 }
  0x36   : > { %588 = dma.done.wait (%p688_p8), %s176_s27, 128  }
  0x37   : > { %590 = vsyncadd (%p688_p8), %s176_s27, 4294967168  ;;  %s185_s5 = scalar_lea.sflag [#allocation6], %s749_s25  ;;  %s188_s16 = scalar_lea.vmem [#allocation5], %s752_s26 }
  0x38   : > { %592 = dma.done.wait (%p688_p8), %s185_s5, 128  }
  0x39   : > { %594 = vsyncadd (%p688_p8), %s185_s5, 4294967168  ;;  %v221_v0 = vld [vmem:[%s179_s15] sm:$0xff]  ;;  %v222_v7 = vld [vmem:[%s188_s16] sm:$0xff]  ;;  %s402_s21 = sshll.u32 %s613_s12, 7  ;;  %s213_s18 = scalar_lea.vmem [#allocation7], %s752_s26 }
  0x3a   : > { %v223_v1 = vand.u32 2147483647, %v221_v0  ;;  %v227_v9 = vmax.f32 %v221_v0, 0.0  ;;  %v228_v10 = vmul.f32 %v222_v7, %v221_v0  ;;  %vm245_vm1 = vcmp.ge.f32.partialorder %v221_v0, 0.0  ;;  %s286_s19 = sshll.u32 %s213_s18, 4  ;;  %s284_s29 = scalar_lea.hbm %s809_s2, %s402_s21  ;;  %s287_s19 = int_to_ptr.vmem [resolvable:$true] %s286_s19 }
  0x3b   : > { %v249_v23 = vsub.f32 1.0, %v222_v7  ;;  %v253_v31 = vmul.f32 0.25, %v222_v7  ;;  %s273_s3 = scalar_lea.sflag [#allocation4], %s749_s25  ;;  %s537_s7 = scalar_lea.vmem %s287_s19, 128 }
  0x3c   : > { %v224_v2 = vsub.f32 0.0, %v223_v1  ;;  %v229_v14 = vsub.f32 %v227_v9, %v228_v10  ;;  %p538_p8 = scmp.ne.s32.totalorder %s287_s19, %s537_s7  ;;  %s625_s8 = smov [#allocation7]  }
  0x3d   : > { %v254_v32 = vmul.f32 0.75, %v249_v23  ;;  %s541_s30 = sshll.u32 %s625_s8, 4  ;;  %s542_s30 = int_to_ptr.vmem [resolvable:$false] %s541_s30 }
  0x3e   : > { %v225_v3 = vmul.f32 1.442695, %v224_v2  ;;  %p539_p0 = pnand %p538_p8, %p692_p9  ;;  %s543_s4 = scalar_lea.vmem %s542_s30, 256 }
  0x3f   : > { %v255_v36 = vadd.f32 %v254_v32, %v253_v31  ;;  %p544_p13 = scmp.lt.s32.totalorder %s287_s19, %s542_s30  ;;  %p545_p5 = scmp.lt.s32.totalorder %s543_s4, %s537_s7 }
  0x40   : > { %473 = vpow2.f32 %v225_v3  ;;  %p540_p3 = pneg %p539_p0 }
  0x41   : > { %p546_p12 = por %p545_p5, %p544_p13 }
  0x43   : > { %p547_p6 = pnand %p546_p12, %p540_p3 }
  0x4d   : > { %v474_v4 = vpop.eup %473 }
  0x4e   : > { %v230_v5 = vadd.f32 1.0, %v474_v4  ;;  %v233_v6 = vmul.f32 -0.5, %v474_v4  ;;  %v236_v11 = vand.u32 2147483647, %v474_v4 }
  0x50   : > { %475 = vlog2.f32 %v230_v5  ;;  %v234_v8 = vadd.f32 1.0, %v233_v6  ;;  %vm237_vm0 = vcmp.lt.f32.partialorder %v236_v11, 0.0004427343 }
  0x51   : > { %477 = vrcp.f32 %v230_v5 }
  0x52   : > { %v235_v12 = vmul.f32 %v474_v4, %v234_v8 }
  0x5d   : > { %v476_v13 = vpop.eup %475 }
  0x5e   : > { %v478_v15 = vpop.eup %477  ;;  %v232_v16 = vmul.f32 0.6931472, %v476_v13 }
  0x5f   : > { %v242_v17 = vmul.f32 %v478_v15, %v230_v5 }
  0x60   : > { %v238_v18 = vsel %vm237_vm0, %v235_v12, %v232_v16 }
  0x61   : > { %v239_v19 = vadd.f32 %v238_v18, %v229_v14  ;;  %v243_v20 = vsub.f32 2.0, %v242_v17 }
  0x63   : > { %v244_v21 = vmul.f32 %v478_v15, %v243_v20 }
  0x65   : > { %v246_v22 = vmul.f32 %v474_v4, %v244_v21 }
  0x67   : > { %v247_v24 = vsel %vm245_vm1, %v244_v21, %v246_v22 }
  0x68   : > { %v248_v25 = vmul.f32 %v247_v24, %v222_v7  ;;  %v250_v26 = vsub.f32 1.0, %v247_v24 }
  0x6a   : > { %v251_v27 = vmul.f32 %v250_v26, %v249_v23 }
  0x6c   : > { %v252_v28 = vadd.f32 %v251_v27, %v248_v25 }
  0x6e   : > { %v256_v29 = vsub.f32 1.0, %v252_v28 }
  0x70   : > { %v257_v30 = vmax.f32 %v256_v29, 0.0 }
  0x72   : > { %479 = vrsqrt.f32 %v257_v30  ;;  %vm260_vm2 = vcmp.eq.f32.partialorder %v257_v30, inf  ;;  %v263_v34 = vand.u32 2147483648, %v257_v30  ;;  %vm262_vm3 = vcmp.eq.f32.partialorder %v257_v30, 0.0 }
  0x7f   : > { %v480_v33 = vpop.eup %479 }
  0x80   : > { %v259_v35 = vmul.f32 %v480_v33, %v257_v30 }
  0x82   : > { %v261_v37 = vsel %vm260_vm2, %v257_v30, %v259_v35 }
  0x83   : > { %v264_v38 = vsel %vm262_vm3, %v263_v34, %v261_v37 }
  0x84   : > { %v265_v39 = vmul.f32 %v264_v38, %v257_v30 }
  0x86   : > { %v266_v40 = vmul.f32 %v265_v39, %v255_v36 }
  0x88   : > { %v267_v41 = vmul.f32 %v266_v40, %v239_v19 }
  0x8a   : > { %271 = vst [vmem:[%s213_s18] sm:$0xff] %v267_v41 }
  0x8b   : > { %550 = shalt.err (!%p547_p6)
}
  0x8c   : > { %s551_s12 = scalar_lea.hbm %s284_s29, 128  ;;  %s555_s26 = scalar_lea.hbm %s809_s2, 256 }
  0x8d   : > { %p552_p7 = scmp.ne.s32.totalorder %s284_s29, %s551_s12  ;;  %p556_p4 = scmp.lt.s32.totalorder %s284_s29, %s809_s2 }
  0x8e   : > { %p557_p10 = scmp.lt.s32.totalorder %s555_s26, %s551_s12 }
  0x8f   : > { %p553_p1 = pnand %p552_p7, %p692_p9 }
  0x90   : > { %p558_p8 = por %p557_p10, %p556_p4 }
  0x91   : > { %p554_p2 = pneg %p553_p1 }
  0x93   : > { %p559_p0 = pnand %p558_p8, %p554_p2 }
  0x95   : > { %562 = shalt.err (!%p559_p0)
}
  0x96   : > { %409 = dma.vmem_to_hbm [thread:$0]  (%p692_p9), %s287_s19, 128, %s284_s29, %s273_s3  }
  0x97 PF: > { %s298_s5 = sand.u32 1, %s601_s9   ;;  %p816_p3 = scmp.ge.s32.totalorder %s621_s14, 2 }
  0x98   : > { %s299_s16 = scalar_lea.sflag [#allocation4], %s298_s5 }
  0x99   : > { %p419_p13 = pnand %p816_p3, %p699_p11 }
  0x9b   : > { %p420_p5 = pneg %p419_p13 }
  0x9d   : > { %596 = dma.done.wait (%p420_p5), %s299_s16, 128  }
  0x9e   : > { %598 = vsyncadd (%p420_p5), %s299_s16, 4294967168  ;;  %s21_s14 = sadd.s32 1, %s621_s14   ;;  %s817_s9 = smov %s605_s10 }
  0x9f   : > { %p18_p12 = scmp.ge.s32.totalorder %s21_s14, 4   ;;  %s818_s10 = smov %s609_s11 }
  0xa0   : > { %s819_s11 = smov %s697_s23  ;;  %s820_s12 = smov %s617_s13 }
  0xa1   : > { %s821_s13 = smov %s823_s17  ;;  %20 = sbr.rel (!%p18_p12) target bundleno = 8 (0x8), region = 90 }
  0xa6   :  { %304 = vsyncpa [#allocation3], 1 }
  0xa7   :  { %306 = vsyncpa [#allocation3 + $0x1], 1 }
  0xa8   :  { %307 = vsyncpa [#allocation6], 1 }
  0xa9   :  { %309 = vsyncpa [#allocation6 + $0x1], 1 }
  0xaa   :  { %310 = vsyncpa [#allocation4], 1 }
  0xab   :  { %312 = vsyncpa [#allocation4 + $0x1], 1 }

</bundles_post_ra>
